<compile_context>
chip_gen: v7x
topology: tpu7x:2x2x1
jax: 0.10.0
libtpu: 0.0.40
codegen_flags: <defaults>
</compile_context>

<pallas_src>
import jax
import jax.numpy as jnp
from jax.experimental import pallas as pl
from jax.experimental.pallas import tpu as pltpu


def _affine_kernel(scale_ref, bias_ref, x_ref, o_ref):
    # scale_ref / bias_ref: SMEM (C,) f32 per-channel affine params.
    # x_ref / o_ref:        VMEM (TILE_H, W) tiles of the current channel
    #                       (channel axis is a squeezed grid dim).
    c = pl.program_id(0)
    o_ref[...] = x_ref[...].astype(jnp.float32) * scale_ref[c] + bias_ref[c]


def albumentations_adapter_forward(x, mean, std, *,
                                   target_block_bytes=2 << 20,
                                   tile_h=None):
    """Equivalent to AlbumentationsAdapter(A.Normalize(mean, std,
    max_pixel_value=1.0)).forward(x) for x of shape (C, H, W).
    """
    C, H, W = x.shape

    # Fold Normalize into one FMA: o = x * (1/std) + (-mean/std).
    inv_std = 1.0 / std.astype(jnp.float32)
    scale = inv_std                                  # (C,)
    bias = (-mean.astype(jnp.float32)) * inv_std     # (C,)

    # Sublane-dense row tiling: block = (1 channel, TILE_H rows, full W).
    # TILE_H is a multiple of 8 (or the full H), sized for ~target_block_bytes.
    if tile_h is None:
        rows = (target_block_bytes // (4 * max(W, 1))) // 8 * 8
    else:
        rows = (int(tile_h) // 8) * 8
    if rows >= H or rows < 8:
        tile_h = H            # one block spans all rows of the channel
    else:
        tile_h = rows

    grid = (C, pl.cdiv(H, tile_h))   # ragged tail handled by boundary masking

    return pl.pallas_call(
        _affine_kernel,
        out_shape=jax.ShapeDtypeStruct((C, H, W), jnp.float32),
        grid=grid,
        in_specs=[
            pl.BlockSpec(memory_space=pltpu.MemorySpace.SMEM),       # scale (C,)
            pl.BlockSpec(memory_space=pltpu.MemorySpace.SMEM),       # bias  (C,)
            pl.BlockSpec((None, tile_h, W), lambda c, h: (c, h, 0)),  # x tile
        ],
        out_specs=pl.BlockSpec((None, tile_h, W), lambda c, h: (c, h, 0)),
        compiler_params=pltpu.CompilerParams(
            dimension_semantics=("parallel", "parallel")),
    )(scale, bias, x)


def _reference(x, mean, std):
    # Pure-JAX reference of the adapter's semantics:
    #   CHW -> HWC, (img - mean) / std over channel-last axis, HWC -> CHW.
    x_hwc = jnp.moveaxis(x.astype(jnp.float32), 0, -1)
    ref_hwc = (x_hwc - mean) / std
    return jnp.moveaxis(ref_hwc, -1, 0)


if __name__ == "__main__":
    key = jax.random.PRNGKey(0)
    k1, k2 = jax.random.split(key)

    # Case 1: typical small image; one block per channel.
    C, H, W = 4, 16, 16
    x = jax.random.uniform(k1, (C, H, W), dtype=jnp.float32)
    mean = jnp.array([0.485, 0.456, 0.406, 0.5], dtype=jnp.float32)
    std = jnp.array([0.229, 0.224, 0.225, 0.25], dtype=jnp.float32)

    out = jax.block_until_ready(albumentations_adapter_forward(x, mean, std))
    ref = _reference(x, mean, std)
    assert out.shape == (C, H, W) and out.dtype == jnp.float32
    assert jnp.allclose(out, ref, atol=1e-5, rtol=1e-5)

    # Case 2: ragged row tiling (H not a multiple of TILE_H) — exercises the
    # cdiv-grid boundary-block masking path recommended by the review.
    C2, H2, W2 = 3, 20, 24
    x2 = jax.random.uniform(k2, (C2, H2, W2), dtype=jnp.float32)
    mean2 = jnp.array([0.485, 0.456, 0.406], dtype=jnp.float32)
    std2 = jnp.array([0.229, 0.224, 0.225], dtype=jnp.float32)

    out2 = jax.block_until_ready(
        albumentations_adapter_forward(x2, mean2, std2, tile_h=8))
    ref2 = _reference(x2, mean2, std2)
    assert out2.shape == (C2, H2, W2) and out2.dtype == jnp.float32
    assert jnp.allclose(out2, ref2, atol=1e-5, rtol=1e-5)

    print("KERNEL_OK")
</pallas_src>

<mosaic_0001>
module attributes {stable_mosaic.version = 11 : i64} {
  func.func @_affine_kernel(%arg0: i32, %arg1: i32, %arg2: memref<4xf32, #tpu.memory_space<smem>>, %arg3: memref<4xf32, #tpu.memory_space<smem>>, %arg4: memref<1x16x16xf32, #tpu.memory_space<vmem>>, %arg5: memref<1x16x16xf32, #tpu.memory_space<vmem>>) attributes {dimension_semantics = [#tpu.dimension_semantics<parallel>, #tpu.dimension_semantics<parallel>], iteration_bounds = array<i64: 4, 1>, scalar_prefetch = 0 : i64, scratch_operands = 0 : i64, tpu.core_type = #tpu.core_type<tc>, window_params = [{transform_indices = @transform_0, window_bounds = array<i64: 4>}, {transform_indices = @transform_1, window_bounds = array<i64: 4>}, {transform_indices = @transform_2, window_bounds = array<i64: 1, 16, 16>}, {transform_indices = @transform_3, window_bounds = array<i64: 1, 16, 16>}]} {
    %c0 = arith.constant 0 : index
    %c0_0 = arith.constant 0 : index
    %c0_1 = arith.constant 0 : index
    %0 = vector.load %arg4[%c0, %c0_0, %c0_1] : memref<1x16x16xf32, #tpu.memory_space<vmem>>, vector<1x16x16xf32>
    %1 = vector.shape_cast %0 : vector<1x16x16xf32> to vector<16x16xf32>
    %2 = arith.index_cast %arg0 : i32 to index
    %3 = memref.load %arg2[%2] : memref<4xf32, #tpu.memory_space<smem>>
    %4 = vector.broadcast %3 : f32 to vector<16x16xf32>
    %5 = arith.mulf %1, %4 : vector<16x16xf32>
    %6 = arith.index_cast %arg0 : i32 to index
    %7 = memref.load %arg3[%6] : memref<4xf32, #tpu.memory_space<smem>>
    %8 = vector.broadcast %7 : f32 to vector<16x16xf32>
    %9 = arith.addf %5, %8 : vector<16x16xf32>
    %c0_2 = arith.constant 0 : index
    %c0_3 = arith.constant 0 : index
    %c0_4 = arith.constant 0 : index
    %10 = vector.load %arg5[%c0_2, %c0_3, %c0_4] : memref<1x16x16xf32, #tpu.memory_space<vmem>>, vector<1x16x16xf32>
    %11 = vector.shape_cast %10 : vector<1x16x16xf32> to vector<16x16xf32>
    %12 = vector.shape_cast %9 : vector<16x16xf32> to vector<1x16x16xf32>
    tpu.vector_store %arg5[%c0_2, %c0_3, %c0_4], %12 {strides = array<i32>} : memref<1x16x16xf32, #tpu.memory_space<vmem>>, vector<1x16x16xf32>,
    return
  }
  func.func @transform_0(%arg0: i32, %arg1: i32) -> i32 {
    %c0_i32 = arith.constant 0 : i32
    %c0_i32_0 = arith.constant 0 : i32
    return %c0_i32 : i32
  }
  func.func @transform_1(%arg0: i32, %arg1: i32) -> i32 {
    %c0_i32 = arith.constant 0 : i32
    %c0_i32_0 = arith.constant 0 : i32
    return %c0_i32 : i32
  }
  func.func @transform_2(%arg0: i32, %arg1: i32) -> (i32, i32, i32) {
    %c0_i32 = arith.constant 0 : i32
    %c0_i32_0 = arith.constant 0 : i32
    return %arg0, %arg1, %c0_i32 : i32, i32, i32
  }
  func.func @transform_3(%arg0: i32, %arg1: i32) -> (i32, i32, i32) {
    %c0_i32 = arith.constant 0 : i32
    %c0_i32_0 = arith.constant 0 : i32
    return %arg0, %arg1, %c0_i32 : i32, i32, i32
  }
}

</mosaic_0001>

<bundles_post_ra>
// kernel: tpu_custom_call.1
= control target key start
LH: loop header
LB: loop body
LE: loop exit
PB: predicated region body
PF: predicated region fallthrough
CT: control target
= control target key end

     0   :  { %8 = vsyncpa [#allocation5], 0  ;;  %s882_s0 = inlined_call_operand.hbm [shape: f32[4], index: 0, kind: input, shape index: {}]   ;;  %s883_s1 = inlined_call_operand.vmem [shape: f32[4], index: 1, kind: input, shape index: {}]   ;;  %s884_s2 = inlined_call_operand.hbm [shape: f32[4,16,16], index: 2, kind: input, shape index: {}]   ;;  %s885_s3 = inlined_call_operand.hbm [shape: f32[4,16,16], index: 3, kind: output, shape index: {}]  }
   0x1   :  { %9 = vsyncpa [#allocation6], 0 }
   0x2   :  { %10 = vsyncpa [#allocation3], 0 }
   0x3   :  { %12 = vsyncpa [#allocation3 + $0x1], 0 }
   0x4   :  { %13 = vsyncpa [#allocation4], 0 }
   0x5   :  { %15 = vsyncpa [#allocation4 + $0x1], 0  ;;  %s660_s12 = smov 0   ;;  %s662_s13 = smov 0  }
   0x6   :  { %s664_s14 = smov 0   ;;  %s666_s15 = smov 0  }
   0x7   :  { %s668_s16 = smov 0   ;;  %s670_s17 = smov 0  }
   0x8 LB: > { %s374_s18 = sadd.s32 4294967295, %s630_s17   ;;  %s375_s19 = sadd.s32 4294967294, %s630_s17   ;;  %s630_s17 = sphi %s670_s17, %s21_s17   ;;  %s626_s16 = sphi %s668_s16, %s905_s16   ;;  %s622_s15 = sphi %s666_s15, %s904_s15   ;;  %s618_s14 = sphi %s664_s14, %s903_s14   ;;  %s614_s13 = sphi %s662_s13, %s902_s13   ;;  %s610_s12 = sphi %s660_s12, %s901_s12  }
   0x9   : > { %s84_s20 = sadd.s32 1, %s618_s14  ;;  %p91_p0 = scmp.ne.s32.totalorder %s618_s14, %s614_s13 }
   0xa   : > { %p92_p1 = scmp.eq.s32.totalorder %s630_s17, 0  ;;  %p97_p2 = scmp.ne.s32.totalorder %s614_s13, %s610_s12 }
   0xb   : > { %p698_p3 = scmp.eq.s32.totalorder %s374_s18, 0  ;;  %p123_p4 = scmp.eq.s32.totalorder %s374_s18, 3 }
   0xc   : > { %p93_p5 = por %p92_p1, %p91_p0  ;;  %p129_p6 = scmp.eq.s32.totalorder %s375_s19, 3 }
   0xd   : > { %s890_s21 = scalar_select %p698_p3, 1, 0 }
   0xe   : > { %p704_p7 = por %p698_p3, %p97_p2  ;;  %p708_p8 = por %p123_p4, %p91_p0 }
   0xf   : > { %p712_p9 = por %p129_p6, %p97_p2  ;;  %p376_p10 = scmp.ge.s32.totalorder %s630_s17, 1 }
  0x10   : > { %s891_s22 = scalar_select %p704_p7, 1, 0 }
  0x11   : > { %s892_s23 = scalar_select %p708_p8, 1, 0 }
  0x12   : > { %s893_s24 = scalar_select %p712_p9, 1, 0 }
  0x13   : > { %p136_p11 = scmp.lt.s32.totalorder %s630_s17, 5  ;;  %p424_p13 = scmp.lt.s32.totalorder %s630_s17, 4 }
  0x14   : > { %s158_s28 = sshll.u32 %s883_s1, 4  ;;  %s169_s4 = sand.u32 1, %s618_s14   ;;  %s159_s28 = int_to_ptr.vmem [resolvable:$true] %s158_s28 }
  0x15   : > { %p718_p12 = pnand %p376_p10, %p136_p11  ;;  %p728_p1 = pnand %p424_p13, %p93_p5 }
  0x16   : > { %s33_s5 = sadd.s32 1, %s626_s16  ;;  %s482_s8 = scalar_lea.hbm %s882_s0, 16 }
  0x17   : > { %p407_p0 = pneg %p718_p12  ;;  %p483_p4 = scmp.ne.s32.totalorder %s882_s0, %s482_s8 }
  0x18   : > { %p489_p11 = scmp.lt.u32.totalorder %s482_s8, %s882_s0 }
  0x19   : > { %p734_p2 = pnand %p407_p0, %p698_p3 }
  0x1b   : > { %p484_p5 = pneg %p734_p2 }
  0x1d   : > { %p485_p6 = pnand %p484_p5, %p483_p4 }
  0x1f   : > { %p486_p10 = pneg %p485_p6 }
  0x21   : > { %p491_p13 = pnand %p489_p11, %p486_p10 }
  0x23   : > { %494 = shalt.err (!%p491_p13)
}
  0x24   : > { %s632_s19 = smov [#allocation2]   ;;  %s495_s6 = scalar_lea.vmem %s159_s28, 16 }
  0x25   : > { %410 = dma.hbm_to_smem (!%p734_p2), %s882_s0, 16, %s632_s19, [#allocation5]  }
  0x26   : > { %p496_p0 = scmp.ne.s32.totalorder %s159_s28, %s495_s6  ;;  %p503_p7 = scmp.lt.s32.totalorder %s159_s28, %s159_s28 }
  0x27   : > { %p504_p4 = scmp.lt.s32.totalorder %s495_s6, %s495_s6 }
  0x28   : > { %p498_p9 = pnand %p496_p0, %p484_p5 }
  0x29   : > { %p505_p6 = por %p504_p4, %p503_p7 }
  0x2a   : > { %p499_p8 = pneg %p498_p9 }
  0x2c   : > { %p506_p3 = pnand %p505_p6, %p499_p8 }
  0x2e   : > { %509 = shalt.err (!%p506_p3)
}
  0x2f   : > { %s633_s7 = smov [#allocation7]   ;;  %p35_p10 = scmp.ge.s32.totalorder %s33_s5, 4 }
  0x30   : > { %413 = dma.vmem_to_smem (!%p734_p2), %s159_s28, 16, %s633_s7, [#allocation6]  }
  0x31   : > { %s380_s8 = sshll.u32 %s169_s4, 4  ;;  %s393_s9 = sshll.u32 %s626_s16, 8 }
  0x32   : > { %s907_s5 = smov (%p35_p10, %s33_s5), 0  ;;  %s766_s30 = scalar_lea.hbm %s884_s2, %s393_s9 }
  0x33   : > { %s79_s18 = ssub.s32 %s626_s16, %s907_s5  ;;  %s173_s19 = scalar_lea.vmem [#allocation8], %s380_s8 }
  0x34   : > { %s182_s28 = sshll.u32 %s173_s19, 4  ;;  %p82_p3 = scmp.eq.s32.totalorder %s79_s18, 0  ;;  %s770_s28 = int_to_ptr.vmem [resolvable:$true] %s182_s28 }
  0x35   : > { %s779_s27 = scalar_lea.sflag [#allocation3], %s169_s4  ;;  %s510_s6 = scalar_lea.hbm %s766_s30, 256 }
  0x36   : > { %s775_s26 = scalar_select %p82_p3, %s618_s14, %s84_s20  }
  0x37   : > { %p511_p7 = scmp.ne.s32.totalorder %s766_s30, %s510_s6  ;;  %p512_p8 = pneg %p728_p1 }
  0x38   : > { %s515_s9 = scalar_lea.hbm %s884_s2, 1024  ;;  %p516_p5 = scmp.lt.u32.totalorder %s766_s30, %s884_s2 }
  0x39   : > { %p513_p9 = pnand %p512_p8, %p511_p7  ;;  %p517_p11 = scmp.lt.u32.totalorder %s515_s9, %s510_s6 }
  0x3a   : > { %p519_p0 = scmp.lt.u32.totalorder %s510_s6, %s766_s30 }
  0x3b   : > { %p514_p2 = pneg %p513_p9  ;;  %p518_p13 = por %p517_p11, %p516_p5 }
  0x3d   : > { %p520_p4 = por %p519_p0, %p518_p13 }
  0x3f   : > { %p521_p6 = pnand %p520_p4, %p514_p2 }
  0x41   : > { %524 = shalt.err (!%p521_p6)
}
  0x42   : > { %s525_s20 = scalar_lea.vmem %s770_s28, 256  ;;  %s634_s4 = smov [#allocation8]  }
  0x43   : > { %p526_p10 = scmp.ne.s32.totalorder %s770_s28, %s525_s20  ;;  %s530_s18 = sshll.u32 %s634_s4, 4  ;;  %s531_s18 = int_to_ptr.vmem [resolvable:$false] %s530_s18 }
  0x44   : > { %s532_s19 = scalar_lea.vmem %s531_s18, 512  ;;  %p533_p9 = scmp.lt.s32.totalorder %s770_s28, %s531_s18 }
  0x45   : > { %p528_p3 = pnand %p526_p10, %p512_p8  ;;  %p534_p5 = scmp.lt.s32.totalorder %s532_s19, %s525_s20 }
  0x47   : > { %p529_p7 = pneg %p528_p3  ;;  %p535_p11 = por %p534_p5, %p533_p9 }
  0x49   : > { %p536_p13 = pnand %p535_p11, %p529_p7 }
  0x4b   : > { %539 = shalt.err (!%p536_p13)
}
  0x4c   : > { %s635_s6 = smov 128   ;;  %s636_s7 = smov 8  }
  0x4d   : > { %417 = dma.hbm_to_vmem [thread:$0]  (!%p728_p1), %s766_s30, 256, %s770_s28, %s779_s27, %s635_s6, %s635_s6, %s636_s7  }
  0x4e   : > { %194 = sbr.rel (%p718_p12) target bundleno = 122 (0x7a), region = 32  ;;  %p897_p8 = scmp.ne.s32.totalorder (!%p718_p12), %s890_s21, 0 }
  0x55   : > { %593 = dma.done.wait (%p897_p8), [#allocation5], 16  }
  0x56   : > { %595 = vsyncadd (%p897_p8), [#allocation5], 4294967280 }
  0x57   : > { %597 = dma.done.wait (%p897_p8), [#allocation6], 16  }
  0x58   : > { %599 = vsyncadd (%p897_p8), [#allocation6], 4294967280  ;;  %s818_s8 = sand.u32 1, %s614_s13   ;;  %p898_p12 = scmp.ne.s32.totalorder %s891_s22, 0 }
  0x59   : > { %s386_s25 = sshll.u32 %s818_s8, 4  ;;  %s205_s29 = scalar_lea.sflag [#allocation3], %s818_s8 }
  0x5a   : > { %s208_s30 = scalar_lea.vmem [#allocation8], %s386_s25 }
  0x5b   : > { %601 = dma.done.wait (%p898_p12), %s205_s29, 256  }
  0x5c   : > { %603 = vsyncadd (%p898_p12), %s205_s29, 4294967040 }
  0x5d   : > { %213 = sfence }
  0x5e   : > { %s236_s21 = sld [smem:[#allocation2 + %s622_s15]]  ;;  %v234_v0 = vld [vmem:[%s208_s30] sm:$0xff]  ;;  %s231_s27 = scalar_lea.vmem [#allocation9], %s386_s25  ;;  %v235_v1 = vld [vmem:[%s208_s30 + $0x8] sm:$0xff]  ;;  %vm244_vm0 = vcmask 130048  }
  0x5f   : > { %s240_s28 = sld [smem:[#allocation7 + %s622_s15]]  ;;  %s263_s9 = sshll.u32 %s231_s27, 4  ;;  %s829_s9 = int_to_ptr.vmem [resolvable:$true] %s263_s9 }
  0x60   : > { %s394_s10 = sshll.u32 %s622_s15, 8  ;;  %s248_s4 = scalar_lea.sflag [#allocation4], %s818_s8 }
  0x61   : > { %s834_s20 = scalar_lea.hbm %s885_s3, %s394_s10  ;;  %s540_s15 = scalar_lea.vmem %s829_s9, 256 }
  0x62   : > { %p541_p1 = scmp.ne.s32.totalorder %s829_s9, %s540_s15  ;;  %p899_p2 = scmp.ne.s32.totalorder %s892_s23, 0 }
  0x63   : > { %s637_s18 = smov [#allocation9]  }
  0x64   : > { %v237_v2 = vstv %s236_s21  ;;  %p542_p0 = pnand %p541_p1, %p899_p2  ;;  %s544_s19 = sshll.u32 %s637_s18, 4  ;;  %s545_s19 = int_to_ptr.vmem [resolvable:$false] %s544_s19 }
  0x65   : > { %v238_v3 = vmul.f32 %v237_v2, %v234_v0  ;;  %v241_v4 = vstv %s240_s28  ;;  %v239_v5 = vmul.f32 %v237_v2, %v235_v1  ;;  %s546_s6 = scalar_lea.vmem %s545_s19, 512  ;;  %p547_p6 = scmp.lt.s32.totalorder %s829_s9, %s545_s19 }
  0x66   : > { %p543_p4 = pneg %p542_p0  ;;  %p548_p10 = scmp.lt.s32.totalorder %s546_s6, %s540_s15 }
  0x67   : > { %v242_v6 = vadd.f32 %v241_v4, %v238_v3  ;;  %v243_v7 = vadd.f32 %v241_v4, %v239_v5 }
  0x68   : > { %p549_p3 = por %p548_p10, %p547_p6 }
  0x69   : > { %245 = vst.msk [vmem:[%s231_s27] sm:$0xff] %vm244_vm0, %v242_v6  ;;  %246 = vst.msk [vmem:[%s231_s27 + $0x8] sm:$0xff] %vm244_vm0, %v243_v7 }
  0x6a   : > { %p550_p7 = pnand %p549_p3, %p543_p4 }
  0x6c   : > { %553 = shalt.err (!%p550_p7)
}
  0x6d   : > { %s554_s7 = scalar_lea.hbm %s834_s20, 256  ;;  %s558_s30 = scalar_lea.hbm %s885_s3, 1024 }
  0x6e   : > { %p555_p9 = scmp.ne.s32.totalorder %s834_s20, %s554_s7  ;;  %p559_p13 = scmp.lt.u32.totalorder %s834_s20, %s885_s3 }
  0x6f   : > { %p560_p8 = scmp.lt.u32.totalorder %s558_s30, %s554_s7  ;;  %p562_p1 = scmp.lt.u32.totalorder %s554_s7, %s834_s20 }
  0x70   : > { %p556_p5 = pnand %p555_p9, %p899_p2 }
  0x71   : > { %p561_p12 = por %p560_p8, %p559_p13 }
  0x72   : > { %p557_p11 = pneg %p556_p5 }
  0x73   : > { %p563_p0 = por %p562_p1, %p561_p12 }
  0x75   : > { %p564_p4 = pnand %p563_p0, %p557_p11 }
  0x77   : > { %567 = shalt.err (!%p564_p4)
}
  0x78   : > { %s638_s27 = smov 128   ;;  %s639_s10 = smov 8  }
  0x79   : > { %405 = dma.vmem_to_hbm [thread:$0]  (%p899_p2), %s829_s9, 256, %s834_s20, %s248_s4, %s638_s27, %s638_s27, %s639_s10  }
  0x7a PF: > { %p427_p6 = scmp.ge.s32.totalorder %s630_s17, 2  ;;  %s278_s22 = sand.u32 1, %s610_s12  }
  0x7b   : > { %p900_p10 = scmp.ne.s32.totalorder %s893_s24, 0  ;;  %s279_s11 = scalar_lea.sflag [#allocation4], %s278_s22 }
  0x7d   : > { %p419_p3 = pnand %p427_p6, %p900_p10 }
  0x7f   : > { %605 = dma.done.wait (!%p419_p3), %s279_s11, 256  }
  0x80   : > { %607 = vsyncadd (!%p419_p3), %s279_s11, 4294967040  ;;  %s21_s17 = sadd.s32 1, %s630_s17   ;;  %s901_s12 = smov %s614_s13 }
  0x81   : > { %p18_p7 = scmp.ge.s32.totalorder %s21_s17, 6   ;;  %s902_s13 = smov %s618_s14 }
  0x82   : > { %s903_s14 = smov %s775_s26  ;;  %s904_s15 = smov %s626_s16 }
  0x83   : > { %s905_s16 = smov %s907_s5  ;;  %20 = sbr.rel (!%p18_p7) target bundleno = 8 (0x8), region = 87 }
  0x8a   :  { %284 = vsyncpa [#allocation3], 1 }
  0x8b   :  { %286 = vsyncpa [#allocation3 + $0x1], 1 }
  0x8c   :  { %287 = vsyncpa [#allocation4], 1 }
  0x8d   :  { %289 = vsyncpa [#allocation4 + $0x1], 1 }
  0x8e   :  { %290 = vsyncpa [#allocation5], 1 }
  0x8f   :  { %292 = vsyncpa [#allocation5 + $0x1], 1 }
  0x90   :  { %293 = vsyncpa [#allocation6], 1 }
  0x91   :  { %295 = vsyncpa [#allocation6 + $0x1], 1 }

</bundles_post_ra>
